<compile_context>
chip_gen: v7x
topology: tpu7x:2x2x1
jax: 0.10.0
libtpu: 0.0.40
codegen_flags: <defaults>
</compile_context>

<pallas_src>
import math
import functools

import jax
import jax.numpy as jnp
from jax.experimental import pallas as pl
from jax.experimental.pallas import tpu as pltpu


def _mhsa_kernel(x_ref, wqkv_ref, wo_ref, bo_ref, z_ref, a_ref,
                 q_sc, k_sc, v_sc, zcat_sc, *,
                 num_heads, head_dim, tq, compute_dtype, exp_dtype):
    # x_ref:    (T, d_in)          full sequence for the current batch element
    # wqkv_ref: (3, d_in, d_out)   pre-transposed [Wq.T, Wk.T, Wv.T]
    # wo_ref:   (d_out, d_out)     pre-transposed output projection
    # bo_ref:   (1, d_out)
    # z_ref:    (tq, d_out)        current query tile of Z
    # a_ref:    (H, tq, T)         current query tile of A
    # q/k/v_sc: (T, d_out)         per-batch projections (compute_dtype)
    # zcat_sc:  (tq, d_out)        per-tile head-concat slab (compute_dtype)
    d_out = num_heads * head_dim
    qi = pl.program_id(1)

    # ---- Once per batch element: Q/K/V projections into VMEM scratch.
    # Three separate (T,d_in)x(d_in,d_out) dots instead of one fused
    # (T,3*d_out) dot: avoids materializing a T*3*d_out f32 temporary in VMEM
    # (a spike that can blow v7x's 64 MiB at large T/d_out) and shortens the
    # first-tile bubble; each intermediate is 1/3 the size and transient.
    @pl.when(qi == 0)
    def _():
        x = x_ref[...]
        q_sc[...] = jnp.dot(x, wqkv_ref[0],
                            preferred_element_type=jnp.float32).astype(compute_dtype)
        k_sc[...] = jnp.dot(x, wqkv_ref[1],
                            preferred_element_type=jnp.float32).astype(compute_dtype)
        v_sc[...] = jnp.dot(x, wqkv_ref[2],
                            preferred_element_type=jnp.float32).astype(compute_dtype)

    row0 = pl.multiple_of(qi * tq, tq)
    q_t = q_sc[pl.ds(row0, tq), :]                              # (tq, d_out)
    k_all = k_sc[...]                                           # (T, d_out)
    v_all = v_sc[...]                                           # (T, d_out)

    scale = 1.0 / math.sqrt(float(head_dim))

    for h in range(num_heads):                                  # static unroll
        lo = h * head_dim
        hi = lo + head_dim
        q_h = q_t[:, lo:hi]                                     # (tq, d_h)
        k_h = k_all[:, lo:hi]                                   # (T,  d_h)
        v_h = v_all[:, lo:hi]                                   # (T,  d_h)

        # scores: (tq, d_h) x (T, d_h)^T -> (tq, T), no materialized transpose
        s = jax.lax.dot_general(
            q_h, k_h,
            dimension_numbers=(((1,), (1,)), ((), ())),
            preferred_element_type=jnp.float32) * scale

        # numerically stable softmax; exp optionally in bf16 (EUP fast path on
        # v6e/v7x), denominator summed in f32, divide via EUP approx reciprocal
        s_max = jnp.max(s, axis=-1, keepdims=True)
        e = jnp.exp((s - s_max).astype(exp_dtype))
        denom = jnp.sum(e.astype(jnp.float32), axis=-1, keepdims=True)
        a_h = e * pl.reciprocal(denom, approx=True)             # (tq, T)

        # TODO(synk): torch.nn.Dropout(p=0.2) on A is applied only in training
        # mode; implemented here as eval-mode identity (no RNG masking).
        a_ref[h] = a_h.astype(a_ref.dtype)

        # attention-weighted values, written straight into the head's columns
        z_h = jnp.dot(a_h.astype(compute_dtype), v_h,
                      preferred_element_type=jnp.float32)       # (tq, d_h)
        # TODO(synk): for head_dim < 128 these column writes are masked
        # partial stores; if they dominate the bundle, amortize one lane-dense
        # re-layout before the Wo matmul instead of per-head narrow writes.
        zcat_sc[:, lo:hi] = z_h.astype(compute_dtype)

    # output projection: Zcat @ Wo.T + bo  (Wo already transposed host-side)
    z_out = jnp.dot(zcat_sc[...], wo_ref[...],
                    preferred_element_type=jnp.float32) + bo_ref[...]
    z_ref[...] = z_out.astype(z_ref.dtype)


def _vmem_capacity_bytes():
    """Per-TensorCore VMEM (128 MiB v5e/v6e, 64 MiB v7x); conservative fallback."""
    try:
        return int(pltpu.get_tpu_info().vmem_capacity_bytes)
    except Exception:
        return 64 * 2**20


def _vmem_bytes(T, d_in, d_out, num_heads, tq, *, compute_dtype, a_dtype, out_dtype):
    """Rough footprint: persistent scratch + double-buffered pipeline blocks."""
    cs = jnp.dtype(compute_dtype).itemsize
    ab = jnp.dtype(a_dtype).itemsize
    ob = jnp.dtype(out_dtype).itemsize
    scratch = (3 * T * d_out + tq * d_out) * cs                  # Q/K/V + Zcat
    io = 2 * (T * d_in * cs                                      # x block
              + 3 * d_in * d_out * cs                            # wqkv
              + d_out * d_out * cs                               # wo
              + d_out * 4                                        # bo (f32)
              + tq * d_out * ob                                  # Z out block
              + num_heads * tq * T * ab)                         # A out block
    return scratch + io


def _pick_query_tile(T, max_tile, fits):
    """Largest query tile <= max_tile dividing T whose VMEM footprint fits."""
    cands = []
    if T <= max_tile:
        cands.append(T)
    cands += [c for c in (512, 256, 128, 64, 32, 16, 8)
              if c <= max_tile and c < T and T % c == 0]
    if not cands:
        return T                         # ragged T: single full-sequence tile
    for c in cands:
        if fits(c):
            return c
    return cands[-1]                     # nothing fits comfortably: smallest


def multihead_self_attention(x, wq, wk, wv, wo, bo, *, num_heads,
                             compute_dtype=jnp.bfloat16,
                             a_dtype=jnp.bfloat16,
                             exp_dtype=jnp.float32,
                             max_query_tile=256):
    """x: (B, T, d_in); torch-layout weights wq/wk/wv: (d_out, d_in),
    wo: (d_out, d_out), bo: (d_out,).  Returns (Z (B,T,d_out), A (B,H,T,T))."""
    B, T, d_in = x.shape
    d_out = wq.shape[0]
    assert d_out % num_heads == 0
    d_h = d_out // num_heads
    out_dtype = x.dtype

    # Host-side (one-time) layout work: transpose + stack projections so the
    # kernel only ever does clean (M,K)x(K,N) MXU matmuls (no in-kernel .T).
    wqkv_t = jnp.stack([wq.T, wk.T, wv.T], axis=0).astype(compute_dtype)
    wo_t = wo.T.astype(compute_dtype)
    bo2 = bo.reshape(1, d_out).astype(jnp.float32)
    x_c = x.astype(compute_dtype)

    # VMEM-aware query-tile selection, capped at the real device capacity.
    vmem_cap = _vmem_capacity_bytes()
    cap_target = vmem_cap - max(8 * 2**20, vmem_cap // 8)        # headroom
    budget = functools.partial(_vmem_bytes, T, d_in, d_out, num_heads,
                               compute_dtype=compute_dtype, a_dtype=a_dtype,
                               out_dtype=out_dtype)
    tq = _pick_query_tile(T, max_query_tile, lambda c: budget(c) <= cap_target)
    if T % tq != 0:
        tq = T
    grid = (B, T // tq)

    vmem_limit = int(min(cap_target, max(32 * 2**20, 2 * budget(tq))))

    kernel = functools.partial(_mhsa_kernel, num_heads=num_heads, head_dim=d_h,
                               tq=tq, compute_dtype=compute_dtype,
                               exp_dtype=exp_dtype)

    z, a = pl.pallas_call(
        kernel,
        out_shape=(
            jax.ShapeDtypeStruct((B, T, d_out), out_dtype),
            jax.ShapeDtypeStruct((B, num_heads, T, T), a_dtype),
        ),
        grid_spec=pltpu.PrefetchScalarGridSpec(
            num_scalar_prefetch=0,
            grid=grid,
            in_specs=[
                # full sequence per batch element; same block index across the
                # query-tile axis, so it is only DMA'd once per batch element.
                pl.BlockSpec((pl.Squeezed(), T, d_in), lambda b, q: (b, 0, 0)),
                # NOTE: constant-index weights are still double-buffered; for
                # very large d_in/d_out on v7x, single-buffer them (Buffered(1)
                # / one-shot DMA into scratch) to reclaim one copy of each.
                pl.BlockSpec((3, d_in, d_out), lambda b, q: (0, 0, 0)),
                pl.BlockSpec((d_out, d_out), lambda b, q: (0, 0)),
                pl.BlockSpec((1, d_out), lambda b, q: (0, 0)),
            ],
            out_specs=[
                pl.BlockSpec((pl.Squeezed(), tq, d_out),
                             lambda b, q: (b, q, 0)),
                pl.BlockSpec((pl.Squeezed(), num_heads, tq, T),
                             lambda b, q: (b, 0, q, 0)),
            ],
            scratch_shapes=[
                pltpu.VMEM((T, d_out), compute_dtype),   # Q (full sequence)
                pltpu.VMEM((T, d_out), compute_dtype),   # K
                pltpu.VMEM((T, d_out), compute_dtype),   # V
                pltpu.VMEM((tq, d_out), compute_dtype),  # head-concat slab
            ],
        ),
        compiler_params=pltpu.CompilerParams(
            # batch axis is independent (megacore-parallel); the query-tile
            # axis carries the per-batch Q/K/V scratch, so it is "arbitrary".
            dimension_semantics=("parallel", "arbitrary"),
            vmem_limit_bytes=vmem_limit,
        ),
    )(x_c, wqkv_t, wo_t, bo2)
    return z, a


def _reference(x, wq, wk, wv, wo, bo, *, num_heads):
    B, T, d_in = x.shape
    d_out = wq.shape[0]
    d_h = d_out // num_heads
    q = (x @ wq.T).reshape(B, T, num_heads, d_h).transpose(0, 2, 1, 3)
    k = (x @ wk.T).reshape(B, T, num_heads, d_h).transpose(0, 2, 1, 3)
    v = (x @ wv.T).reshape(B, T, num_heads, d_h).transpose(0, 2, 1, 3)
    s = jnp.einsum("bhqd,bhkd->bhqk", q, k) / jnp.sqrt(jnp.float32(d_h))
    a = jax.nn.softmax(s, axis=-1)
    z = jnp.einsum("bhqk,bhkd->bhqd", a, v)
    z = z.transpose(0, 2, 1, 3).reshape(B, T, d_out)
    z = z @ wo.T + bo
    return z, a


if __name__ == "__main__":
    # Small deterministic config consistent with the module's forward.
    B, T, D_IN, D_OUT, H = 2, 8, 32, 32, 4

    key = jax.random.PRNGKey(0)
    kx, kq, kk, kv, ko, kb = jax.random.split(key, 6)

    x = jax.random.normal(kx, (B, T, D_IN), dtype=jnp.float32)

    # torch.nn.Linear-style uniform(-1/sqrt(fan_in), 1/sqrt(fan_in)) init
    def lin_init(k, shape, fan_in):
        bound = 1.0 / math.sqrt(fan_in)
        return jax.random.uniform(k, shape, jnp.float32, -bound, bound)

    wq = lin_init(kq, (D_OUT, D_IN), D_IN)
    wk = lin_init(kk, (D_OUT, D_IN), D_IN)
    wv = lin_init(kv, (D_OUT, D_IN), D_IN)
    wo = lin_init(ko, (D_OUT, D_OUT), D_OUT)
    bo = lin_init(kb, (D_OUT,), D_OUT)

    z_ref, a_ref = _reference(x, wq, wk, wv, wo, bo, num_heads=H)

    # 1) f32 compute + f32 A: near-exact check of the kernel's semantics.
    z32, a32 = multihead_self_attention(x, wq, wk, wv, wo, bo, num_heads=H,
                                        compute_dtype=jnp.float32,
                                        a_dtype=jnp.float32)
    jax.block_until_ready((z32, a32))
    assert z32.shape == (B, T, D_OUT) and a32.shape == (B, H, T, T)
    assert jnp.allclose(z32, z_ref, rtol=1e-2, atol=1e-3)
    assert jnp.allclose(a32, a_ref, rtol=1e-2, atol=1e-3)

    # 2) default fast path: bf16 MXU compute + bf16 A (looser tolerance).
    zbf, abf = multihead_self_attention(x, wq, wk, wv, wo, bo, num_heads=H)
    jax.block_until_ready((zbf, abf))
    assert zbf.shape == (B, T, D_OUT) and abf.shape == (B, H, T, T)
    assert abf.dtype == jnp.bfloat16
    assert jnp.allclose(zbf.astype(jnp.float32), z_ref, rtol=5e-2, atol=5e-2)
    assert jnp.allclose(abf.astype(jnp.float32), a_ref, rtol=5e-2, atol=5e-2)

    print("KERNEL_OK")
</pallas_src>

<mosaic_0001>
module attributes {stable_mosaic.version = 11 : i64} {
  func.func @_mhsa_kernel(%arg0: i32, %arg1: i32, %arg2: memref<1x8x32xf32, #tpu.memory_space<vmem>>, %arg3: memref<3x32x32xf32, #tpu.memory_space<vmem>>, %arg4: memref<32x32xf32, #tpu.memory_space<vmem>>, %arg5: memref<1x32xf32, #tpu.memory_space<vmem>>, %arg6: memref<1x8x32xf32, #tpu.memory_space<vmem>>, %arg7: memref<1x4x8x8xf32, #tpu.memory_space<vmem>>, %arg8: memref<8x32xf32, #tpu.memory_space<vmem>>, %arg9: memref<8x32xf32, #tpu.memory_space<vmem>>, %arg10: memref<8x32xf32, #tpu.memory_space<vmem>>, %arg11: memref<8x32xf32, #tpu.memory_space<vmem>>) attributes {dimension_semantics = [#tpu.dimension_semantics<parallel>, #tpu.dimension_semantics<arbitrary>], iteration_bounds = array<i64: 2, 1>, scalar_prefetch = 0 : i64, scratch_operands = 4 : i64, tpu.core_type = #tpu.core_type<tc>, window_params = [{transform_indices = @transform_0, window_bounds = array<i64: 1, 8, 32>}, {pipeline_mode = #tpu.pipeline_mode<synchronous>, transform_indices = @transform_1, window_bounds = array<i64: 3, 32, 32>}, {pipeline_mode = #tpu.pipeline_mode<synchronous>, transform_indices = @transform_2, window_bounds = array<i64: 32, 32>}, {pipeline_mode = #tpu.pipeline_mode<synchronous>, transform_indices = @transform_3, window_bounds = array<i64: 1, 32>}, {transform_indices = @transform_4, window_bounds = array<i64: 1, 8, 32>}, {transform_indices = @transform_5, window_bounds = array<i64: 1, 4, 8, 8>}]} {
    %c0_i32 = arith.constant 0 : i32
    %0 = arith.cmpi eq, %arg1, %c0_i32 : i32
    %1 = arith.extui %0 : i1 to i32
    %c0_i32_0 = arith.constant 0 : i32
    %2 = arith.cmpi ne, %1, %c0_i32_0 : i32
    scf.if %2 {
      %c0_52 = arith.constant 0 : index
      %c0_53 = arith.constant 0 : index
      %c0_54 = arith.constant 0 : index
      %102 = vector.load %arg2[%c0_52, %c0_53, %c0_54] : memref<1x8x32xf32, #tpu.memory_space<vmem>>, vector<1x8x32xf32>
      %103 = vector.shape_cast %102 : vector<1x8x32xf32> to vector<8x32xf32>
      %c0_55 = arith.constant 0 : index
      %c0_56 = arith.constant 0 : index
      %c0_57 = arith.constant 0 : index
      %104 = vector.load %arg3[%c0_55, %c0_56, %c0_57] : memref<3x32x32xf32, #tpu.memory_space<vmem>>, vector<1x32x32xf32>
      %105 = vector.shape_cast %104 : vector<1x32x32xf32> to vector<32x32xf32>
      %cst_58 = arith.constant dense<0.000000e+00> : vector<8x32xf32>
      %106 = tpu.matmul %103, %105, %cst_58 {dimension_numbers = #tpu.dot_dimension_numbers<[1], [0], [0], [1], [0, 0, 1, 1], [], []>} : vector<8x32xf32>, vector<32x32xf32>, vector<8x32xf32> -> vector<8x32xf32>
      %c0_59 = arith.constant 0 : index
      %c0_60 = arith.constant 0 : index
      %107 = vector.load %arg8[%c0_59, %c0_60] : memref<8x32xf32, #tpu.memory_space<vmem>>, vector<8x32xf32>
      tpu.vector_store %arg8[%c0_59, %c0_60], %106 {strides = array<i32>} : memref<8x32xf32, #tpu.memory_space<vmem>>, vector<8x32xf32>,
      %c1_61 = arith.constant 1 : index
      %c0_62 = arith.constant 0 : index
      %c0_63 = arith.constant 0 : index
      %108 = vector.load %arg3[%c1_61, %c0_62, %c0_63] : memref<3x32x32xf32, #tpu.memory_space<vmem>>, vector<1x32x32xf32>
      %109 = vector.shape_cast %108 : vector<1x32x32xf32> to vector<32x32xf32>
      %cst_64 = arith.constant dense<0.000000e+00> : vector<8x32xf32>
      %110 = tpu.matmul %103, %109, %cst_64 {dimension_numbers = #tpu.dot_dimension_numbers<[1], [0], [0], [1], [0, 0, 1, 1], [], []>} : vector<8x32xf32>, vector<32x32xf32>, vector<8x32xf32> -> vector<8x32xf32>
      %c0_65 = arith.constant 0 : index
      %c0_66 = arith.constant 0 : index
      %111 = vector.load %arg9[%c0_65, %c0_66] : memref<8x32xf32, #tpu.memory_space<vmem>>, vector<8x32xf32>
      tpu.vector_store %arg9[%c0_65, %c0_66], %110 {strides = array<i32>} : memref<8x32xf32, #tpu.memory_space<vmem>>, vector<8x32xf32>,
      %c2_67 = arith.constant 2 : index
      %c0_68 = arith.constant 0 : index
      %c0_69 = arith.constant 0 : index
      %112 = vector.load %arg3[%c2_67, %c0_68, %c0_69] : memref<3x32x32xf32, #tpu.memory_space<vmem>>, vector<1x32x32xf32>
      %113 = vector.shape_cast %112 : vector<1x32x32xf32> to vector<32x32xf32>
      %cst_70 = arith.constant dense<0.000000e+00> : vector<8x32xf32>
      %114 = tpu.matmul %103, %113, %cst_70 {dimension_numbers = #tpu.dot_dimension_numbers<[1], [0], [0], [1], [0, 0, 1, 1], [], []>} : vector<8x32xf32>, vector<32x32xf32>, vector<8x32xf32> -> vector<8x32xf32>
      %c0_71 = arith.constant 0 : index
      %c0_72 = arith.constant 0 : index
      %115 = vector.load %arg10[%c0_71, %c0_72] : memref<8x32xf32, #tpu.memory_space<vmem>>, vector<8x32xf32>
      tpu.vector_store %arg10[%c0_71, %c0_72], %114 {strides = array<i32>} : memref<8x32xf32, #tpu.memory_space<vmem>>, vector<8x32xf32>,
    } else {
    }
    %c8_i32 = arith.constant 8 : i32
    %3 = arith.muli %arg1, %c8_i32 : i32
    %4 = tpu.assume_multiple %3, 8 : i32
    %5 = arith.index_cast %4 : i32 to index
    %c0 = arith.constant 0 : index
    %6 = vector.load %arg8[%5, %c0] : memref<8x32xf32, #tpu.memory_space<vmem>>, vector<8x32xf32>
    %c0_1 = arith.constant 0 : index
    %c0_2 = arith.constant 0 : index
    %7 = vector.load %arg9[%c0_1, %c0_2] : memref<8x32xf32, #tpu.memory_space<vmem>>, vector<8x32xf32>
    %c0_3 = arith.constant 0 : index
    %c0_4 = arith.constant 0 : index
    %8 = vector.load %arg10[%c0_3, %c0_4] : memref<8x32xf32, #tpu.memory_space<vmem>>, vector<8x32xf32>
    %9 = vector.extract_strided_slice %6 {offsets = [0, 0], sizes = [8, 8], strides = [1, 1]} : vector<8x32xf32> to vector<8x8xf32>
    %10 = vector.extract_strided_slice %7 {offsets = [0, 0], sizes = [8, 8], strides = [1, 1]} : vector<8x32xf32> to vector<8x8xf32>
    %11 = vector.extract_strided_slice %8 {offsets = [0, 0], sizes = [8, 8], strides = [1, 1]} : vector<8x32xf32> to vector<8x8xf32>
    %cst = arith.constant dense<0.000000e+00> : vector<8x8xf32>
    %12 = tpu.matmul %9, %10, %cst {dimension_numbers = #tpu.dot_dimension_numbers<[1], [1], [0], [0], [0, 0, 1, 0], [], []>} : vector<8x8xf32>, vector<8x8xf32>, vector<8x8xf32> -> vector<8x8xf32>
    %cst_5 = arith.constant 0.353553385 : f32
    %13 = vector.broadcast %cst_5 : f32 to vector<8x8xf32>
    %14 = arith.mulf %12, %13 : vector<8x8xf32>
    %cst_6 = arith.constant dense<0xFF800000> : vector<8xf32>
    %15 = vector.multi_reduction <maximumf>, %14, %cst_6 [1] : vector<8x8xf32> to vector<8xf32>
    %16 = vector.shape_cast %15 : vector<8xf32> to vector<8x1xf32>
    %17 = vector.broadcast %16 : vector<8x1xf32> to vector<8x8xf32>
    %18 = arith.subf %14, %17 : vector<8x8xf32>
    %19 = math.exp %18 : vector<8x8xf32>
    %cst_7 = arith.constant dense<0.000000e+00> : vector<8xf32>
    %20 = vector.multi_reduction <add>, %19, %cst_7 [1] : vector<8x8xf32> to vector<8xf32>
    %21 = vector.shape_cast %20 : vector<8xf32> to vector<8x1xf32>
    %22 = tpu.reciprocal %21 {approx = true} : vector<8x1xf32> -> vector<8x1xf32>
    %23 = vector.broadcast %22 : vector<8x1xf32> to vector<8x8xf32>
    %24 = arith.mulf %19, %23 : vector<8x8xf32>
    %c0_8 = arith.constant 0 : index
    %c0_9 = arith.constant 0 : index
    %c0_10 = arith.constant 0 : index
    %c0_11 = arith.constant 0 : index
    %25 = vector.load %arg7[%c0_8, %c0_9, %c0_10, %c0_11] : memref<1x4x8x8xf32, #tpu.memory_space<vmem>>, vector<1x1x8x8xf32>
    %26 = vector.shape_cast %25 : vector<1x1x8x8xf32> to vector<8x8xf32>
    %27 = vector.shape_cast %24 : vector<8x8xf32> to vector<1x1x8x8xf32>
    tpu.vector_store %arg7[%c0_8, %c0_9, %c0_10, %c0_11], %27 {strides = array<i32>} : memref<1x4x8x8xf32, #tpu.memory_space<vmem>>, vector<1x1x8x8xf32>,
    %cst_12 = arith.constant dense<0.000000e+00> : vector<8x8xf32>
    %28 = tpu.matmul %24, %11, %cst_12 {dimension_numbers = #tpu.dot_dimension_numbers<[1], [0], [0], [1], [0, 0, 1, 1], [], []>} : vector<8x8xf32>, vector<8x8xf32>, vector<8x8xf32> -> vector<8x8xf32>
    %c0_13 = arith.constant 0 : index
    %c0_14 = arith.constant 0 : index
    %29 = vector.load %arg11[%c0_13, %c0_14] : memref<8x32xf32, #tpu.memory_space<vmem>>, vector<8x8xf32>
    tpu.vector_store %arg11[%c0_13, %c0_14], %28 {strides = array<i32>} : memref<8x32xf32, #tpu.memory_space<vmem>>, vector<8x8xf32>,
    %30 = vector.extract_strided_slice %6 {offsets = [0, 8], sizes = [8, 8], strides = [1, 1]} : vector<8x32xf32> to vector<8x8xf32>
    %31 = vector.extract_strided_slice %7 {offsets = [0, 8], sizes = [8, 8], strides = [1, 1]} : vector<8x32xf32> to vector<8x8xf32>
    %32 = vector.extract_strided_slice %8 {offsets = [0, 8], sizes = [8, 8], strides = [1, 1]} : vector<8x32xf32> to vector<8x8xf32>
    %cst_15 = arith.constant dense<0.000000e+00> : vector<8x8xf32>
    %33 = tpu.matmul %30, %31, %cst_15 {dimension_numbers = #tpu.dot_dimension_numbers<[1], [1], [0], [0], [0, 0, 1, 0], [], []>} : vector<8x8xf32>, vector<8x8xf32>, vector<8x8xf32> -> vector<8x8xf32>
    %cst_16 = arith.constant 0.353553385 : f32
    %34 = vector.broadcast %cst_16 : f32 to vector<8x8xf32>
    %35 = arith.mulf %33, %34 : vector<8x8xf32>
    %cst_17 = arith.constant dense<0xFF800000> : vector<8xf32>
    %36 = vector.multi_reduction <maximumf>, %35, %cst_17 [1] : vector<8x8xf32> to vector<8xf32>
    %37 = vector.shape_cast %36 : vector<8xf32> to vector<8x1xf32>
    %38 = vector.broadcast %37 : vector<8x1xf32> to vector<8x8xf32>
    %39 = arith.subf %35, %38 : vector<8x8xf32>
    %40 = math.exp %39 : vector<8x8xf32>
    %cst_18 = arith.constant dense<0.000000e+00> : vector<8xf32>
    %41 = vector.multi_reduction <add>, %40, %cst_18 [1] : vector<8x8xf32> to vector<8xf32>
    %42 = vector.shape_cast %41 : vector<8xf32> to vector<8x1xf32>
    %43 = tpu.reciprocal %42 {approx = true} : vector<8x1xf32> -> vector<8x1xf32>
    %44 = vector.broadcast %43 : vector<8x1xf32> to vector<8x8xf32>
    %45 = arith.mulf %40, %44 : vector<8x8xf32>
    %c0_19 = arith.constant 0 : index
    %c1 = arith.constant 1 : index
    %c0_20 = arith.constant 0 : index
    %c0_21 = arith.constant 0 : index
    %46 = vector.load %arg7[%c0_19, %c1, %c0_20, %c0_21] : memref<1x4x8x8xf32, #tpu.memory_space<vmem>>, vector<1x1x8x8xf32>
    %47 = vector.shape_cast %46 : vector<1x1x8x8xf32> to vector<8x8xf32>
    %48 = vector.shape_cast %45 : vector<8x8xf32> to vector<1x1x8x8xf32>
    tpu.vector_store %arg7[%c0_19, %c1, %c0_20, %c0_21], %48 {strides = array<i32>} : memref<1x4x8x8xf32, #tpu.memory_space<vmem>>, vector<1x1x8x8xf32>,
    %cst_22 = arith.constant dense<0.000000e+00> : vector<8x8xf32>
    %49 = tpu.matmul %45, %32, %cst_22 {dimension_numbers = #tpu.dot_dimension_numbers<[1], [0], [0], [1], [0, 0, 1, 1], [], []>} : vector<8x8xf32>, vector<8x8xf32>, vector<8x8xf32> -> vector<8x8xf32>
    %c0_23 = arith.constant 0 : index
    %c8 = arith.constant 8 : index
    %50 = vector.load %arg11[%c0_23, %c8] : memref<8x32xf32, #tpu.memory_space<vmem>>, vector<8x8xf32>
    tpu.vector_store %arg11[%c0_23, %c8], %49 {strides = array<i32>} : memref<8x32xf32, #tpu.memory_space<vmem>>, vector<8x8xf32>,
    %51 = vector.extract_strided_slice %6 {offsets = [0, 16], sizes = [8, 8], strides = [1, 1]} : vector<8x32xf32> to vector<8x8xf32>
    %52 = vector.extract_strided_slice %7 {offsets = [0, 16], sizes = [8, 8], strides = [1, 1]} : vector<8x32xf32> to vector<8x8xf32>
    %53 = vector.extract_strided_slice %8 {offsets = [0, 16], sizes = [8, 8], strides = [1, 1]} : vector<8x32xf32> to vector<8x8xf32>
    %cst_24 = arith.constant dense<0.000000e+00> : vector<8x8xf32>
    %54 = tpu.matmul %51, %52, %cst_24 {dimension_numbers = #tpu.dot_dimension_numbers<[1], [1], [0], [0], [0, 0, 1, 0], [], []>} : vector<8x8xf32>, vector<8x8xf32>, vector<8x8xf32> -> vector<8x8xf32>
    %cst_25 = arith.constant 0.353553385 : f32
    %55 = vector.broadcast %cst_25 : f32 to vector<8x8xf32>
    %56 = arith.mulf %54, %55 : vector<8x8xf32>
    %cst_26 = arith.constant dense<0xFF800000> : vector<8xf32>
    %57 = vector.multi_reduction <maximumf>, %56, %cst_26 [1] : vector<8x8xf32> to vector<8xf32>
    %58 = vector.shape_cast %57 : vector<8xf32> to vector<8x1xf32>
    %59 = vector.broadcast %58 : vector<8x1xf32> to vector<8x8xf32>
    %60 = arith.subf %56, %59 : vector<8x8xf32>
    %61 = math.exp %60 : vector<8x8xf32>
    %cst_27 = arith.constant dense<0.000000e+00> : vector<8xf32>
    %62 = vector.multi_reduction <add>, %61, %cst_27 [1] : vector<8x8xf32> to vector<8xf32>
    %63 = vector.shape_cast %62 : vector<8xf32> to vector<8x1xf32>
    %64 = tpu.reciprocal %63 {approx = true} : vector<8x1xf32> -> vector<8x1xf32>
    %65 = vector.broadcast %64 : vector<8x1xf32> to vector<8x8xf32>
    %66 = arith.mulf %61, %65 : vector<8x8xf32>
    %c0_28 = arith.constant 0 : index
    %c2 = arith.constant 2 : index
    %c0_29 = arith.constant 0 : index
    %c0_30 = arith.constant 0 : index
    %67 = vector.load %arg7[%c0_28, %c2, %c0_29, %c0_30] : memref<1x4x8x8xf32, #tpu.memory_space<vmem>>, vector<1x1x8x8xf32>
    %68 = vector.shape_cast %67 : vector<1x1x8x8xf32> to vector<8x8xf32>
    %69 = vector.shape_cast %66 : vector<8x8xf32> to vector<1x1x8x8xf32>
    tpu.vector_store %arg7[%c0_28, %c2, %c0_29, %c0_30], %69 {strides = array<i32>} : memref<1x4x8x8xf32, #tpu.memory_space<vmem>>, vector<1x1x8x8xf32>,
    %cst_31 = arith.constant dense<0.000000e+00> : vector<8x8xf32>
    %70 = tpu.matmul %66, %53, %cst_31 {dimension_numbers = #tpu.dot_dimension_numbers<[1], [0], [0], [1], [0, 0, 1, 1], [], []>} : vector<8x8xf32>, vector<8x8xf32>, vector<8x8xf32> -> vector<8x8xf32>
    %c0_32 = arith.constant 0 : index
    %c16 = arith.constant 16 : index
    %71 = vector.load %arg11[%c0_32, %c16] : memref<8x32xf32, #tpu.memory_space<vmem>>, vector<8x8xf32>
    tpu.vector_store %arg11[%c0_32, %c16], %70 {strides = array<i32>} : memref<8x32xf32, #tpu.memory_space<vmem>>, vector<8x8xf32>,
    %72 = vector.extract_strided_slice %6 {offsets = [0, 24], sizes = [8, 8], strides = [1, 1]} : vector<8x32xf32> to vector<8x8xf32>
    %73 = vector.extract_strided_slice %7 {offsets = [0, 24], sizes = [8, 8], strides = [1, 1]} : vector<8x32xf32> to vector<8x8xf32>
    %74 = vector.extract_strided_slice %8 {offsets = [0, 24], sizes = [8, 8], strides = [1, 1]} : vector<8x32xf32> to vector<8x8xf32>
    %cst_33 = arith.constant dense<0.000000e+00> : vector<8x8xf32>
    %75 = tpu.matmul %72, %73, %cst_33 {dimension_numbers = #tpu.dot_dimension_numbers<[1], [1], [0], [0], [0, 0, 1, 0], [], []>} : vector<8x8xf32>, vector<8x8xf32>, vector<8x8xf32> -> vector<8x8xf32>
    %cst_34 = arith.constant 0.353553385 : f32
    %76 = vector.broadcast %cst_34 : f32 to vector<8x8xf32>
    %77 = arith.mulf %75, %76 : vector<8x8xf32>
    %cst_35 = arith.constant dense<0xFF800000> : vector<8xf32>
    %78 = vector.multi_reduction <maximumf>, %77, %cst_35 [1] : vector<8x8xf32> to vector<8xf32>
    %79 = vector.shape_cast %78 : vector<8xf32> to vector<8x1xf32>
    %80 = vector.broadcast %79 : vector<8x1xf32> to vector<8x8xf32>
    %81 = arith.subf %77, %80 : vector<8x8xf32>
    %82 = math.exp %81 : vector<8x8xf32>
    %cst_36 = arith.constant dense<0.000000e+00> : vector<8xf32>
    %83 = vector.multi_reduction <add>, %82, %cst_36 [1] : vector<8x8xf32> to vector<8xf32>
    %84 = vector.shape_cast %83 : vector<8xf32> to vector<8x1xf32>
    %85 = tpu.reciprocal %84 {approx = true} : vector<8x1xf32> -> vector<8x1xf32>
    %86 = vector.broadcast %85 : vector<8x1xf32> to vector<8x8xf32>
    %87 = arith.mulf %82, %86 : vector<8x8xf32>
    %c0_37 = arith.constant 0 : index
    %c3 = arith.constant 3 : index
    %c0_38 = arith.constant 0 : index
    %c0_39 = arith.constant 0 : index
    %88 = vector.load %arg7[%c0_37, %c3, %c0_38, %c0_39] : memref<1x4x8x8xf32, #tpu.memory_space<vmem>>, vector<1x1x8x8xf32>
    %89 = vector.shape_cast %88 : vector<1x1x8x8xf32> to vector<8x8xf32>
    %90 = vector.shape_cast %87 : vector<8x8xf32> to vector<1x1x8x8xf32>
    tpu.vector_store %arg7[%c0_37, %c3, %c0_38, %c0_39], %90 {strides = array<i32>} : memref<1x4x8x8xf32, #tpu.memory_space<vmem>>, vector<1x1x8x8xf32>,
    %cst_40 = arith.constant dense<0.000000e+00> : vector<8x8xf32>
    %91 = tpu.matmul %87, %74, %cst_40 {dimension_numbers = #tpu.dot_dimension_numbers<[1], [0], [0], [1], [0, 0, 1, 1], [], []>} : vector<8x8xf32>, vector<8x8xf32>, vector<8x8xf32> -> vector<8x8xf32>
    %c0_41 = arith.constant 0 : index
    %c24 = arith.constant 24 : index
    %92 = vector.load %arg11[%c0_41, %c24] : memref<8x32xf32, #tpu.memory_space<vmem>>, vector<8x8xf32>
    tpu.vector_store %arg11[%c0_41, %c24], %91 {strides = array<i32>} : memref<8x32xf32, #tpu.memory_space<vmem>>, vector<8x8xf32>,
    %c0_42 = arith.constant 0 : index
    %c0_43 = arith.constant 0 : index
    %93 = vector.load %arg11[%c0_42, %c0_43] : memref<8x32xf32, #tpu.memory_space<vmem>>, vector<8x32xf32>
    %c0_44 = arith.constant 0 : index
    %c0_45 = arith.constant 0 : index
    %94 = vector.load %arg4[%c0_44, %c0_45] : memref<32x32xf32, #tpu.memory_space<vmem>>, vector<32x32xf32>
    %cst_46 = arith.constant dense<0.000000e+00> : vector<8x32xf32>
    %95 = tpu.matmul %93, %94, %cst_46 {dimension_numbers = #tpu.dot_dimension_numbers<[1], [0], [0], [1], [0, 0, 1, 1], [], []>} : vector<8x32xf32>, vector<32x32xf32>, vector<8x32xf32> -> vector<8x32xf32>
    %c0_47 = arith.constant 0 : index
    %c0_48 = arith.constant 0 : index
    %96 = vector.load %arg5[%c0_47, %c0_48] : memref<1x32xf32, #tpu.memory_space<vmem>>, vector<1x32xf32>
    %97 = vector.broadcast %96 : vector<1x32xf32> to vector<8x32xf32>
    %98 = arith.addf %95, %97 : vector<8x32xf32>
    %c0_49 = arith.constant 0 : index
    %c0_50 = arith.constant 0 : index
    %c0_51 = arith.constant 0 : index
    %99 = vector.load %arg6[%c0_49, %c0_50, %c0_51] : memref<1x8x32xf32, #tpu.memory_space<vmem>>, vector<1x8x32xf32>
    %100 = vector.shape_cast %99 : vector<1x8x32xf32> to vector<8x32xf32>
    %101 = vector.shape_cast %98 : vector<8x32xf32> to vector<1x8x32xf32>
    tpu.vector_store %arg6[%c0_49, %c0_50, %c0_51], %101 {strides = array<i32>} : memref<1x8x32xf32, #tpu.memory_space<vmem>>, vector<1x8x32xf32>,
    return
  }
  func.func @transform_0(%arg0: i32, %arg1: i32) -> (i32, i32, i32) {
    %c0_i32 = arith.constant 0 : i32
    %c0_i32_0 = arith.constant 0 : i32
    %c0_i32_1 = arith.constant 0 : i32
    return %arg0, %c0_i32, %c0_i32_0 : i32, i32, i32
  }
  func.func @transform_1(%arg0: i32, %arg1: i32) -> (i32, i32, i32) {
    %c0_i32 = arith.constant 0 : i32
    %c0_i32_0 = arith.constant 0 : i32
    %c0_i32_1 = arith.constant 0 : i32
    %c0_i32_2 = arith.constant 0 : i32
    return %c0_i32, %c0_i32_0, %c0_i32_1 : i32, i32, i32
  }
  func.func @transform_2(%arg0: i32, %arg1: i32) -> (i32, i32) {
    %c0_i32 = arith.constant 0 : i32
    %c0_i32_0 = arith.constant 0 : i32
    %c0_i32_1 = arith.constant 0 : i32
    return %c0_i32, %c0_i32_0 : i32, i32
  }
  func.func @transform_3(%arg0: i32, %arg1: i32) -> (i32, i32) {
    %c0_i32 = arith.constant 0 : i32
    %c0_i32_0 = arith.constant 0 : i32
    %c0_i32_1 = arith.constant 0 : i32
    return %c0_i32, %c0_i32_0 : i32, i32
  }
  func.func @transform_4(%arg0: i32, %arg1: i32) -> (i32, i32, i32) {
    %c0_i32 = arith.constant 0 : i32
    %c0_i32_0 = arith.constant 0 : i32
    return %arg0, %arg1, %c0_i32 : i32, i32, i32
  }
  func.func @transform_5(%arg0: i32, %arg1: i32) -> (i32, i32, i32, i32) {
    %c0_i32 = arith.constant 0 : i32
    %c0_i32_0 = arith.constant 0 : i32
    %c0_i32_1 = arith.constant 0 : i32
    return %arg0, %c0_i32, %arg1, %c0_i32_0 : i32, i32, i32, i32
  }
}

</mosaic_0001>

<bundles_post_ra>
// kernel: tpu_custom_call.1
= control target key start
LH: loop header
LB: loop body
LE: loop exit
PB: predicated region body
PF: predicated region fallthrough
CT: control target
= control target key end

     0   :  { %11 = vsyncpa [#allocation7], 0  ;;  %s2424_s0 = inlined_call_operand.hbm [shape: f32[2,8,32], index: 0, kind: input, shape index: {}]   ;;  %s2425_s1 = inlined_call_operand.hbm [shape: f32[3,32,32], index: 1, kind: input, shape index: {}]   ;;  %s2426_s2 = inlined_call_operand.hbm [shape: f32[32,32], index: 2, kind: input, shape index: {}]   ;;  %s2427_s3 = inlined_call_operand.vmem [shape: f32[1,32], index: 3, kind: input, shape index: {}]   ;;  %s2428_s4 = inlined_call_operand.hbm [shape: f32[2,8,32], index: 4, kind: output, shape index: {0}]   ;;  %s2429_s5 = inlined_call_operand.hbm [shape: f32[2,4,8,8], index: 5, kind: output, shape index: {1}]  }
   0x1   :  { %13 = vsyncpa [#allocation7 + $0x1], 0 }
   0x2   :  { %14 = vsyncpa [#allocation10], 0 }
   0x3   :  { %15 = vsyncpa [#allocation8], 0 }
   0x4   :  { %17 = vsyncpa [#allocation8 + $0x1], 0 }
   0x5   :  { %18 = vsyncpa [#allocation14], 0 }
   0x6   :  { %20 = vsyncpa [#allocation14 + $0x1], 0  ;;  %s2037_s18 = smov 0   ;;  %s2039_s19 = smov 0  }
   0x7   :  { %s2041_s20 = smov 0   ;;  %s2043_s21 = smov 0  }
   0x8   :  { %s2045_s22 = smov 0   ;;  %s2047_s23 = smov 0  }
   0x9 LB: > { %s1482_s24 = sadd.s32 4294967295, %s1988_s23   ;;  %s1483_s25 = sadd.s32 4294967294, %s1988_s23   ;;  %s1988_s23 = sphi %s2047_s23, %s26_s23   ;;  %s1984_s22 = sphi %s2045_s22, %s2451_s22   ;;  %s1980_s21 = sphi %s2043_s21, %s2450_s21   ;;  %s1976_s20 = sphi %s2041_s20, %s2449_s20   ;;  %s1972_s19 = sphi %s2039_s19, %s2448_s19   ;;  %s1968_s18 = sphi %s2037_s18, %s2447_s18  }
   0xa   : > { %p58_p0 = scmp.ne.s32.totalorder %s1972_s19, %s1968_s18  ;;  %p2071_p1 = scmp.eq.s32.totalorder %s1482_s24, 0 }
   0xb   : > { %p2075_p2 = scmp.eq.s32.totalorder %s1482_s24, 1  ;;  %p153_p3 = scmp.eq.s32.totalorder %s1483_s25, 1 }
   0xc   : > { %s2434_s26 = scalar_select %p2071_p1, 1, 0 }
   0xd   : > { %p2081_p4 = por %p2071_p1, %p58_p0  ;;  %p1484_p5 = scmp.ge.s32.totalorder %s1988_s23, 1 }
   0xe   : > { %p2086_p6 = por %p153_p3, %p58_p0  ;;  %p188_p7 = scmp.lt.s32.totalorder %s1988_s23, 3 }
   0xf   : > { %s2436_s28 = scalar_select %p2081_p4, 1, 0 }
  0x10   : > { %s2437_s29 = scalar_select %p2086_p6, 1, 0 }
  0x11   : > { %p2091_p8 = pnand %p1484_p5, %p188_p7  ;;  %s1990_s6 = smov [#allocation9]  }
  0x12   : > { %s200_s7 = sshll.u32 %s1990_s6, 4  ;;  %s1991_s9 = smov [#allocation11]   ;;  %s2095_s7 = int_to_ptr.vmem [resolvable:$true] %s200_s7 }
  0x13   : > { %p1682_p9 = pneg %p2091_p8  ;;  %s213_s10 = sshll.u32 %s1991_s9, 4  ;;  %s2106_s10 = int_to_ptr.vmem [resolvable:$true] %s213_s10 }
  0x14   : > { %s1784_s13 = scalar_lea.hbm %s2425_s1, 1536 }
  0x15   : > { %p2102_p11 = pnand %p1682_p9, %p2071_p1  ;;  %p1785_p12 = scmp.ne.s32.totalorder %s2425_s1, %s1784_s13 }
  0x16   : > { %p1791_p5 = scmp.lt.u32.totalorder %s1784_s13, %s2425_s1 }
  0x17   : > { %p1786_p13 = pneg %p2102_p11 }
  0x19   : > { %p1787_p0 = pnand %p1786_p13, %p1785_p12 }
  0x1b   : > { %p1788_p3 = pneg %p1787_p0 }
  0x1d   : > { %p1793_p7 = pnand %p1791_p5, %p1788_p3 }
  0x1f   : > { %1796 = shalt.err (!%p1793_p7)
}
  0x20   : > { %s1797_s24 = scalar_lea.vmem %s2095_s7, 1536  ;;  %p1805_p1 = scmp.lt.s32.totalorder %s2095_s7, %s2095_s7 }
  0x21   : > { %p1798_p9 = scmp.ne.s32.totalorder %s2095_s7, %s1797_s24  ;;  %p1806_p12 = scmp.lt.s32.totalorder %s1797_s24, %s1797_s24 }
  0x23   : > { %p1800_p10 = pnand %p1798_p9, %p1786_p13  ;;  %p1807_p0 = por %p1806_p12, %p1805_p1 }
  0x25   : > { %p1801_p6 = pneg %p1800_p10 }
  0x27   : > { %p1808_p4 = pnand %p1807_p0, %p1801_p6 }
  0x29   : > { %1811 = shalt.err (!%p1808_p4)
}
  0x2a   : > { %s1992_s25 = smov 128   ;;  %s1993_s6 = smov 8  }
  0x2b   : > { %1685 = dma.hbm_to_vmem [thread:$0]  (!%p2102_p11), %s2425_s1, 1536, %s2095_s7, [#allocation10], %s1992_s25, %s1992_s25, %s1993_s6  }
  0x2c   : > { %s1812_s14 = scalar_lea.hbm %s2426_s2, 512 }
  0x2d   : > { %p1813_p1 = scmp.ne.s32.totalorder %s2426_s2, %s1812_s14  ;;  %p1819_p10 = scmp.lt.u32.totalorder %s1812_s14, %s2426_s2 }
  0x2f   : > { %p1815_p4 = pnand %p1813_p1, %p1786_p13 }
  0x31   : > { %p1816_p6 = pneg %p1815_p4 }
  0x33   : > { %p1821_p3 = pnand %p1819_p10, %p1816_p6 }
  0x35   : > { %1824 = shalt.err (!%p1821_p3)
}
  0x36   : > { %s1825_s7 = scalar_lea.vmem %s2106_s10, 512  ;;  %p1833_p12 = scmp.lt.s32.totalorder %s2106_s10, %s2106_s10 }
  0x37   : > { %p1826_p5 = scmp.ne.s32.totalorder %s2106_s10, %s1825_s7  ;;  %p1834_p0 = scmp.lt.s32.totalorder %s1825_s7, %s1825_s7 }
  0x39   : > { %p1828_p7 = pnand %p1826_p5, %p1786_p13  ;;  %p1835_p1 = por %p1834_p0, %p1833_p12 }
  0x3b   : > { %p1829_p9 = pneg %p1828_p7 }
  0x3d   : > { %p1836_p4 = pnand %p1835_p1, %p1829_p9 }
  0x3f   : > { %1839 = shalt.err (!%p1836_p4)
}
  0x40   : > { %1688 = dma.hbm_to_vmem [thread:$0]  (!%p2102_p11), %s2426_s2, 512, %s2106_s10, [#allocation10], %s1992_s25, %s1992_s25, %s1993_s6  }
  0x41   : > { %s38_s12 = sadd.s32 1, %s1984_s22  ;;  %s45_s13 = sadd.s32 1, %s1976_s20 }
  0x42   : > { %p40_p13 = scmp.ge.s32.totalorder %s38_s12, 2  ;;  %p52_p6 = scmp.ne.s32.totalorder %s1976_s20, %s1972_s19 }
  0x43   : > { %p53_p10 = scmp.eq.s32.totalorder %s1988_s23, 0  ;;  %p1702_p3 = scmp.lt.s32.totalorder %s1988_s23, 2 }
  0x44   : > { %s2453_s12 = smov (%p40_p13, %s38_s12), 0  ;;  %p2170_p7 = por %p2075_p2, %p52_p6 }
  0x45   : > { %p54_p5 = por %p53_p10, %p52_p6  ;;  %s42_s14 = ssub.s32 %s1984_s22, %s2453_s12 }
  0x46   : > { %s2440_s8 = scalar_select %p2170_p7, 1, 0 }
  0x47   : > { %s230_s15 = sand.u32 1, %s1976_s20   ;;  %p43_p9 = scmp.eq.s32.totalorder %s42_s14, 0 }
  0x48   : > { %s1488_s10 = sshll.u32 %s230_s15, 3  ;;  %s1489_s25 = sshll.u32 %s1984_s22, 7 }
  0x49   : > { %s2179_s6 = scalar_select %p43_p9, %s1976_s20, %s45_s13  }
  0x4a   : > { %s2184_s24 = scalar_lea.hbm %s2424_s0, %s1489_s25  ;;  %s234_s27 = scalar_lea.vmem [#allocation6], %s1488_s10 }
  0x4b   : > { %s241_s7 = sshll.u32 %s234_s27, 4  ;;  %p2188_p2 = pnand %p1702_p3, %p54_p5  ;;  %s2192_s7 = int_to_ptr.vmem [resolvable:$true] %s241_s7 }
  0x4c   : > { %s231_s11 = scalar_lea.sflag [#allocation7], %s230_s15  ;;  %s1840_s13 = scalar_lea.hbm %s2184_s24, 128 }
  0x4d   : > { %p1841_p11 = scmp.ne.s32.totalorder %s2184_s24, %s1840_s13  ;;  %p1842_p12 = pneg %p2188_p2 }
  0x4e   : > { %s1845_s25 = scalar_lea.hbm %s2424_s0, 256  ;;  %p1846_p4 = scmp.lt.u32.totalorder %s2184_s24, %s2424_s0 }
  0x4f   : > { %p1843_p0 = pnand %p1842_p12, %p1841_p11  ;;  %p1847_p13 = scmp.lt.u32.totalorder %s1845_s25, %s1840_s13 }
  0x50   : > { %p1849_p10 = scmp.lt.u32.totalorder %s1840_s13, %s2184_s24 }
  0x51   : > { %p1844_p1 = pneg %p1843_p0  ;;  %p1848_p6 = por %p1847_p13, %p1846_p4 }
  0x53   : > { %p1850_p3 = por %p1849_p10, %p1848_p6 }
  0x55   : > { %p1851_p5 = pnand %p1850_p3, %p1844_p1 }
  0x57   : > { %1854 = shalt.err (!%p1851_p5)
}
  0x58   : > { %s1855_s15 = scalar_lea.vmem %s2192_s7, 128  ;;  %s1994_s27 = smov [#allocation6]  }
  0x59   : > { %p1856_p9 = scmp.ne.s32.totalorder %s2192_s7, %s1855_s15  ;;  %s1860_s14 = sshll.u32 %s1994_s27, 4  ;;  %s1861_s14 = int_to_ptr.vmem [resolvable:$false] %s1860_s14 }
  0x5a   : > { %s1862_s10 = scalar_lea.vmem %s1861_s14, 256  ;;  %p1863_p7 = scmp.lt.s32.totalorder %s2192_s7, %s1861_s14 }
  0x5b   : > { %p1858_p11 = pnand %p1856_p9, %p1842_p12  ;;  %p1864_p4 = scmp.lt.s32.totalorder %s1862_s10, %s1855_s15 }
  0x5d   : > { %p1859_p0 = pneg %p1858_p11  ;;  %p1865_p13 = por %p1864_p4, %p1863_p7 }
  0x5f   : > { %p1866_p6 = pnand %p1865_p13, %p1859_p0 }
  0x61   : > { %1869 = shalt.err (!%p1866_p6)
}
  0x62   : > { %1692 = dma.hbm_to_vmem [thread:$0]  (!%p2188_p2), %s2184_s24, 128, %s2192_s7, %s231_s11  }
  0x63   : > { %250 = sbr.rel (%p2091_p8) target bundleno = 2032 (0x7f0), region = 36  ;;  %s2222_s13 = sand.u32 (!%p2091_p8), 1, %s1972_s19  }
  0x64   : > { %s1491_s25 = sshll.u32 (!%p2091_p8), %s2222_s13, 3  ;;  %s253_s16 = scalar_lea.sflag (!%p2091_p8), [#allocation7], %s2222_s13 }
  0x65   : > { %s256_s17 = scalar_lea.vmem (!%p2091_p8), [#allocation6], %s1491_s25  ;;  %p2442_p7 = scmp.ne.s32.totalorder (!%p2091_p8), %s2436_s28, 0 }
  0x6a   : > { %1951 = dma.done.wait (%p2442_p7), %s253_s16, 128  }
  0x6b   : > { %1953 = vsyncadd (%p2442_p7), %s253_s16, 4294967168  ;;  %p2443_p2 = scmp.ne.s32.totalorder %s2434_s26, 0 }
  0x6d   : > { %1955 = dma.done.wait (%p2443_p2), [#allocation10], 2048  }
  0x6e   : > { %1957 = vsyncadd (%p2443_p2), [#allocation10], 4294965248  ;;  %v1995_v0 = vmov 0.0|0.0   ;;  %vm1996_vm0 = vmmov 0   ;;  %v1997_v1 = vmov 0.0   ;;  %v381_v2 = vld [vmem:[#allocation9 + $0x20] sm:$0xff] }
  0x6f   : > { %1650 = vmatprep.subr.bf16.mxu1 %v1995_v0  ;;  %1644 = vmatprep.subr.bf16.mxu0 %v1995_v0  ;;  %v382_v3 = vld [vmem:[#allocation9 + $0x28] sm:$0xff]  ;;  %v301_v4 = vld [vmem:[#allocation9] sm:$0xff]  ;;  %v383_v7 = vld [vmem:[#allocation9 + $0x30] sm:$0xff]  ;;  %vm305_vm1 = vcmask 261120   ;;  %vm537_vm2 = vcmask 64512   ;;  %s1998_s26 = smov 120  }
  0x70   : > { %1579 = vmatprep.mubr.msk.f32.mxu1 %vm1996_vm0, %v1997_v1  ;;  %1568 = vmatprep.mubr.msk.f32.mxu0 %vm1996_vm0, %v1997_v1  ;;  %v1651_v5 = vpack.c.bf16 %v382_v3, %v381_v2  ;;  %v302_v6 = vld [vmem:[#allocation9 + $0x8] sm:$0xff]  ;;  %v384_v8 = vld [vmem:[#allocation9 + $0x38] sm:$0xff]  ;;  %v303_v10 = vld [vmem:[#allocation9 + $0x10] sm:$0xff]  ;;  %s1999_s28 = smov 112   ;;  %s2000_s30 = smov 104   ;;  %vm874_vm3 = vcmask 130112  }
  0x71   : > { %v1645_v9 = vpack.c.bf16 %v302_v6, %v301_v4  ;;  %v304_v11 = vld [vmem:[#allocation9 + $0x18] sm:$0xff]  ;;  %v1654_v12 = vpack.c.bf16 %v384_v8, %v383_v7  ;;  %v457_v21 = vld [vmem:[#allocation9 + $0x40] sm:$0xff]  ;;  %v458_v22 = vld [vmem:[#allocation9 + $0x48] sm:$0xff]  ;;  %s1495_s24 = sshll.u32 %s2222_s13, 5  ;;  %s2001_s9 = smov 8   ;;  %vm1048_vm4 = vcmask 195712  }
  0x72   : > { %1652 = vmatpush3.bf16.msra.mxu1 %v1651_v5  ;;  %v1648_v13 = vpack.c.bf16 %v304_v11, %v303_v10  ;;  %v300_v14 = vld [vmem:[%s256_s17] sm:$0xff]  ;;  %v1657_v24 = vpack.c.bf16 %v458_v22, %v457_v21  ;;  %s2288_s7 = scalar_lea.vmem [#allocation13], %s1495_s24  ;;  %s2002_s11 = smov 16   ;;  %vm1222_vm5 = vcmask 261312  }
  0x73   : > { %1646 = vmatpush3.bf16.msra.mxu0 %v1645_v9  ;;  %1653 = vmatprep.subr.bf16.mxu1 %v1995_v0  ;;  %v459_v23 = vld [vmem:[#allocation9 + $0x50] sm:$0xff]  ;;  %v460_v25 = vld [vmem:[#allocation9 + $0x58] sm:$0xff]  ;;  %s2003_s15 = smov 24   ;;  %s1523_s27 = sshll.u32 %s1980_s21, 9 }
  0x74   : > { %1647 = vmatprep.subr.bf16.mxu0 %v1995_v0  ;;  %v1660_v26 = vpack.c.bf16 %v460_v25, %v459_v23  ;;  %s1345_s14 = sshll.u32 %s2288_s7, 4  ;;  %s2336_s17 = scalar_lea.hbm %s2429_s5, %s1523_s27  ;;  %s2338_s14 = int_to_ptr.vmem [resolvable:$true] %s1345_s14 }
  0x75   : > { %p2444_p12 = scmp.ne.s32.totalorder %s2440_s8, 0 }
  0x76   : > { %1655 = vmatpush3.bf16.msra.mxu1 %v1654_v12 }
  0x77   : > { %1649 = vmatpush3.bf16.msra.mxu0 %v1648_v13  ;;  %1593 = vmatprep.subr.mxu1 %v1997_v1 }
  0x78   : > { %1656 = vmatprep.subr.bf16.mxu0 %v1995_v0 }
  0x79   : > { %1580 = vmatmul.mubr.msk.f32.vlgmr.msra.gmra.mrb[0].mxu1 %vm305_vm1, %v300_v14 }
  0x7a   : > { %1569 = vmatmul.mubr.msk.f32.vlgmr.msra.gmra.mrb[0].mxu0 %vm305_vm1, %v300_v14  ;;  %1595 = vmatprep.mubr.msk.f32.mxu1 %vm1996_vm0, %v1997_v1 }
  0x7b   : > { %1590 = vmatprep.mubr.msk.f32.mxu0 %vm1996_vm0, %v1997_v1  ;;  %1658 = vmatpush3.bf16.msra.mxu0 %v1657_v24 }
  0x7c   : > { %1659 = vmatprep.subr.bf16.mxu0 %v1995_v0 }
  0x7f   : > { %1661 = vmatpush3.bf16.msra.mxu0 %v1660_v26 }
  0x80   : > { %1613 = vmatprep.subr.mxu0 %v1997_v1 }
  0x82   : > { %1591 = vmatmul.mubr.msk.f32.vlgmr.msra.gmra.mrb[2].mxu0 %vm305_vm1, %v300_v14 }
  0x83   : > { %1615 = vmatprep.mubr.msk.f32.mxu0 %vm1996_vm0, %v1997_v1 }
 0x14c   : > { %v451_v15 = vpop.f32.mrb[0].mxu1 }
 0x14d   : > { %455 = vst.msk [vmem:[#allocation3] sm:$0xff] %vm305_vm1, %v451_v15  ;;  %v1581_v16 = vpop.f32.mrb[1].mxu1  ;;  %v375_v17 = vpop.f32.mrb[0].mxu0 }
 0x14e   : > { %379 = vst.msk [vmem:[#allocation2] sm:$0xff] %vm305_vm1, %v375_v17  ;;  %v1570_v18 = vpop.f32.mrb[1].mxu0 }
 0x154   : > { %v535_v19 = vld [vmem:[#allocation3] sm:$0xff] }
 0x155   : > { %703 = vrot.lane.b32.xlu1 %v535_v19, %s1998_s26  ;;  %1594 = vmatpush3.xpose.msk.msra.mxu1 %vm537_vm2, %v535_v19  ;;  %v534_v20 = vld [vmem:[#allocation2] sm:$0xff]  ;;  %v527_v31 = vpop.f32.mrb[2].mxu0 }
 0x156   : > { %1598 = vmatprep.subr.mxu1 %v1997_v1  ;;  %531 = vst.msk [vmem:[#allocation4] sm:$0xff] %vm305_vm1, %v527_v31  ;;  %v1592_v32 = vpop.f32.mrb[3].mxu0  ;;  %v1228_v31 = vld [vmem:[#allocation11 + $0x18] sm:$0xff] }
 0x158   : > { %1596 = vmatmul.mubr.msk.f32.vlgmr.msra.gmra.mrb[2].mxu1 %vm537_vm2, %v534_v20 }
 0x159   : > { %701 = vrot.lane.b32.xlu1 %v534_v20, %s1998_s26  ;;  %1600 = vmatprep.mubr.msk.f32.mxu1 %vm1996_vm0, %v1997_v1 }
 0x15d   : > { %876 = vrot.lane.b32.xlu1 %v534_v20, %s1999_s28  ;;  %v2272_v38 = vld [vmem:[#allocation4] sm:$0xff] }
 0x15e   : > { %1599 = vmatpush3.msra.mxu1 %v2272_v38 }
 0x15f   : > { %1603 = vmatprep.subr.mxu1 %v1997_v1 }
 0x161   : > { %1052 = vrot.lane.b32.xlu1 %v535_v19, %s2000_s30 }
 0x165   : > { %1050 = vrot.lane.b32.xlu1 %v534_v20, %s2000_s30 }
 0x1c7   : > { %v704_v39 = vpop.permute.xlu1 %703 }
 0x1cb   : > { %v702_v40 = vpop.permute.xlu1 %701 }
 0x1cf   : > { %v877_v41 = vpop.permute.xlu1 %876 }
 0x1d3   : > { %v1053_v44 = vpop.permute.xlu1 %1052 }
 0x1d7   : > { %v1051_v46 = vpop.permute.xlu1 %1050 }
 0x22b   : > { %v610_v27 = vpop.f32.mrb[2].mxu1 }
 0x22c   : > { %v614_v28 = vmul.f32 0.35355338, %v610_v27  ;;  %v1597_v29 = vpop.f32.mrb[3].mxu1  ;;  %v1225_v27 = vld [vmem:[#allocation11] sm:$0xff] }
 0x22e   : > { %v615_v30 = vsel %vm537_vm2, %v614_v28, -inf }
 0x22f   : > { %616 = vmax.xlane.f32.xlu0 %v615_v30  ;;  %v1227_v30 = vld [vmem:[#allocation11 + $0x10] sm:$0xff] }
 0x230   : > { %v1666_v32 = vpack.c.bf16 %v1228_v31, %v1227_v30 }
 0x2bc   : > { %v617_v33 = vpop.xlane.xlu0 %616 }
 0x2bd   : > { %v618_v34 = vsub.f32 %v614_v28, %v617_v33  ;;  %v1226_v28 = vld [vmem:[#allocation11 + $0x8] sm:$0xff] }
 0x2be   : > { %v1663_v29 = vpack.c.bf16 %v1226_v28, %v1225_v27 }
 0x2bf   : > { %v619_v35 = vmul.f32 1.442695, %v618_v34 }
 0x2c1   : > { %1768 = vpow2.f32 %v619_v35 }
 0x2cb   : > { %v1769_v36 = vpop.eup %1768 }
 0x2cc   : > { %v621_v37 = vsel %vm537_vm2, %v1769_v36, 0.0 }
 0x2cd   : > { %622 = vadd.xlane.f32.xlu0 %v621_v37 }
 0x2e3   : > { %878 = vrot.lane.b32.xlu0 %v535_v19, %s1999_s28 }
 0x35a   : > { %v623_v42 = vpop.xlane.xlu0 %622 }
 0x35b   : > { %1770 = vrcp.f32 %v623_v42 }
 0x35e   : > { %v879_v43 = vpop.permute.xlu0 %878 }
 0x35f   : > { %1614 = vmatpush3.xpose.msk.msra.mxu0 %vm537_vm2, %v879_v43 }
 0x360   : > { %1623 = vmatprep.subr.mxu0 %v1997_v1 }
 0x362   : > { %1616 = vmatmul.mubr.msk.f32.vlgmr.msra.gmra.mrb[4].mxu0 %vm537_vm2, %v877_v41 }
 0x363   : > { %1624 = vmatpush3.xpose.msk.msra.mxu0 %vm537_vm2, %v1053_v44  ;;  %1625 = vmatprep.mubr.msk.f32.mxu0 %vm1996_vm0, %v1997_v1 }
 0x364   : > { %1662 = vmatprep.subr.bf16.mxu0 %v1995_v0 }
 0x365   : > { %v1771_v45 = vpop.eup %1770 }
 0x366   : > { %v625_v47 = vmul.f32 %v1771_v45, %v1769_v36  ;;  %1626 = vmatmul.mubr.msk.f32.vlgmr.msra.gmra.mrb[6].mxu0 %vm537_vm2, %v1051_v46 }
 0x367   : > { %1641 = vmatprep.mubr.msk.f32.mxu0 %vm1996_vm0, %v1997_v1  ;;  %1664 = vmatpush3.bf16.msra.mxu0 %v1663_v29 }
 0x368   : > { %626 = vst.msk [vmem:[%s2288_s7] sm:$0xff] %vm537_vm2, %v625_v47  ;;  %1601 = vmatmul.mubr.msk.f32.vlgmr.msra.gmra.mrb[4].mxu1 %vm537_vm2, %v625_v47  ;;  %1665 = vmatprep.subr.bf16.mxu0 %v1995_v0 }
 0x369   : > { %1604 = vmatpush3.xpose.msk.msra.mxu1 %vm537_vm2, %v704_v39  ;;  %1605 = vmatprep.mubr.msk.f32.mxu1 %vm1996_vm0, %v1997_v1 }
 0x36a   : > { %1608 = vmatprep.subr.mxu1 %v1997_v1 }
 0x36b   : > { %1667 = vmatpush3.bf16.msra.mxu0 %v1666_v32 }
 0x36c   : > { %1606 = vmatmul.mubr.msk.f32.vlgmr.msra.gmra.mrb[6].mxu1 %vm537_vm2, %v702_v40 }
 0x36d   : > { %1610 = vmatprep.mubr.msk.f32.mxu1 %vm1996_vm0, %v1997_v1 }
 0x435   : > { %v950_v48 = vpop.f32.mrb[4].mxu0 }
 0x436   : > { %v954_v49 = vmul.f32 0.35355338, %v950_v48  ;;  %v1617_v50 = vpop.f32.mrb[5].mxu0 }
 0x438   : > { %v955_v51 = vsel %vm537_vm2, %v954_v49, -inf }
 0x439   : > { %956 = vmax.xlane.f32.xlu0 %v955_v51  ;;  %v1124_v52 = vpop.f32.mrb[6].mxu0 }
 0x43a   : > { %v1627_v53 = vpop.f32.mrb[7].mxu0  ;;  %v1128_v59 = vmul.f32 0.35355338, %v1124_v52 }
 0x43b   : > { %v696_v54 = vpop.f32.mrb[4].mxu1 }
 0x43c   : > { %700 = vst.msk [vmem:[#allocation5] sm:$0xff] %vm537_vm2, %v696_v54  ;;  %v1602_v55 = vpop.f32.mrb[5].mxu1  ;;  %v1129_v61 = vsel %vm537_vm2, %v1128_v59, -inf }
 0x43f   : > { %v775_v56 = vpop.f32.mrb[6].mxu1 }
 0x440   : > { %v779_v57 = vmul.f32 0.35355338, %v775_v56  ;;  %v1607_v58 = vpop.f32.mrb[7].mxu1 }
 0x442   : > { %v780_v60 = vsel %vm537_vm2, %v779_v57, -inf }
 0x443   : > { %781 = vmax.xlane.f32.xlu1 %v780_v60 }
 0x447   : > { %1130 = vmax.xlane.f32.xlu1 %v1129_v61 }
 0x4c6   : > { %v957_v62 = vpop.xlane.xlu0 %956 }
 0x4c7   : > { %v958_v63 = vsub.f32 %v954_v49, %v957_v62 }
 0x4c9   : > { %v959_v2 = vmul.f32 1.442695, %v958_v63 }
 0x4cb   : > { %1772 = vpow2.f32 %v959_v2 }
 0x4d0   : > { %v782_v3 = vpop.xlane.xlu1 %781 }
 0x4d1   : > { %v783_v11 = vsub.f32 %v779_v57, %v782_v3 }
 0x4d3   : > { %v784_v12 = vmul.f32 1.442695, %v783_v11 }
 0x4d4   : > { %v1131_v4 = vpop.xlane.xlu1 %1130 }
 0x4d5   : > { %v1773_v5 = vpop.eup %1772  ;;  %v1132_v6 = vsub.f32 %v1128_v59, %v1131_v4 }
 0x4d6   : > { %v961_v7 = vsel %vm537_vm2, %v1773_v5, 0.0 }
 0x4d7   : > { %v1133_v8 = vmul.f32 1.442695, %v1132_v6  ;;  %962 = vadd.xlane.f32.xlu0 %v961_v7 }
 0x4d9   : > { %1774 = vpow2.f32 %v1133_v8 }
 0x4da   : > { %1776 = vpow2.f32 %v784_v12 }
 0x4e3   : > { %v1775_v9 = vpop.eup %1774 }
 0x4e4   : > { %v1135_v10 = vsel %vm537_vm2, %v1775_v9, 0.0  ;;  %v1777_v13 = vpop.eup %1776 }
 0x4e5   : > { %1136 = vadd.xlane.f32.xlu1 %v1135_v10  ;;  %v786_v14 = vsel %vm537_vm2, %v1777_v13, 0.0 }
 0x4ed   : > { %794 = vrot.lane.b32.xlu0 %v2272_v38, %s1998_s26  ;;  %s1317_s26 = scalar_lea.sflag [#allocation14], %s2222_s13 }
 0x4f6   : > { %968 = vrot.lane.b32.xlu1 %v2272_v38, %s1999_s28  ;;  %s1870_s28 = scalar_lea.vmem %s2338_s14, 512 }
 0x4f7   : > { %p1871_p8 = scmp.ne.s32.totalorder %s2338_s14, %s1870_s28 }
 0x4f9   : > { %p1872_p1 = pnand %p1871_p8, %p2444_p12 }
 0x4fb   : > { %p1873_p10 = pneg %p1872_p1 }
 0x51a   : > { %787 = vadd.xlane.f32.xlu1 %v786_v14 }
 0x52b   : > { %1142 = vrot.lane.b32.xlu1 %v2272_v38, %s2000_s30  ;;  %s2004_s30 = smov [#allocation13]  }
 0x52c   : > { %s1874_s24 = sshll.u32 %s2004_s30, 4  ;;  %s1875_s24 = int_to_ptr.vmem [resolvable:$false] %s1874_s24 }
 0x52d   : > { %p1877_p3 = scmp.lt.s32.totalorder %s2338_s14, %s1875_s24 }
 0x564   : > { %v963_v15 = vpop.xlane.xlu0 %962 }
 0x565   : > { %1778 = vrcp.f32 %v963_v15 }
 0x568   : > { %v795_v16 = vpop.permute.xlu0 %794 }
 0x569   : > { %1609 = vmatpush3.msra.mxu1 %v795_v16 }
 0x56a   : > { %1618 = vmatprep.subr.mxu1 %v1997_v1 }
 0x56f   : > { %v1779_v17 = vpop.eup %1778 }
 0x570   : > { %v965_v18 = vmul.f32 %v1779_v17, %v1773_v5 }
 0x572   : > { %1508 = vst.msk [vmem:[%s2288_s7 + $0x10] sm:$0xff] %vm537_vm2, %v965_v18  ;;  %v1137_v19 = vpop.xlane.xlu1 %1136 }
 0x573   : > { %1780 = vrcp.f32 %v1137_v19 }
 0x576   : > { %v969_v22 = vpop.permute.xlu1 %968 }
 0x57d   : > { %v1781_v20 = vpop.eup %1780 }
 0x57e   : > { %v1139_v21 = vmul.f32 %v1781_v20, %v1775_v9 }
 0x580   : > { %1512 = vst.msk [vmem:[%s2288_s7 + $0x18] sm:$0xff] %vm537_vm2, %v1139_v21 }
 0x5a7   : > { %v788_v23 = vpop.xlane.xlu1 %787 }
 0x5a8   : > { %1782 = vrcp.f32 %v788_v23 }
 0x5ab   : > { %v1143_v26 = vpop.permute.xlu1 %1142 }
 0x5b2   : > { %v1783_v24 = vpop.eup %1782 }
 0x5b3   : > { %v790_v25 = vmul.f32 %v1783_v24, %v1777_v13 }
 0x5b5   : > { %1504 = vst.msk [vmem:[%s2288_s7 + $0x8] sm:$0xff] %vm537_vm2, %v790_v25  ;;  %1611 = vmatmul.mubr.msk.f32.vlgmr.msra.gmra.mrb[8].mxu1 %vm537_vm2, %v790_v25  ;;  %s1876_s7 = scalar_lea.vmem %s1875_s24, 1024 }
 0x5b6   : > { %1619 = vmatpush3.msra.mxu1 %v969_v22  ;;  %1620 = vmatprep.mubr.msk.f32.mxu1 %vm1996_vm0, %v1997_v1  ;;  %p1878_p5 = scmp.lt.s32.totalorder %s1876_s7, %s1870_s28 }
 0x5b7   : > { %1628 = vmatprep.subr.mxu1 %v1997_v1 }
 0x5b8   : > { %p1879_p9 = por %p1878_p5, %p1877_p3 }
 0x5b9   : > { %1621 = vmatmul.mubr.msk.f32.vlgmr.msra.gmra.mrb[10].mxu1 %vm537_vm2, %v965_v18 }
 0x5ba   : > { %1629 = vmatpush3.msra.mxu1 %v1143_v26  ;;  %1630 = vmatprep.mubr.msk.f32.mxu1 %vm1996_vm0, %v1997_v1  ;;  %p1880_p11 = pnand %p1879_p9, %p1873_p10 }
 0x5bd   : > { %1631 = vmatmul.mubr.msk.f32.vlgmr.msra.gmra.mrb[12].mxu1 %vm537_vm2, %v1139_v21 }
 0x688   : > { %v866_v33 = vpop.f32.mrb[8].mxu1 }
 0x689   : > { %871 = vrot.lane.b32.xlu0 %v866_v33, %s2001_s9  ;;  %v1612_v34 = vpop.f32.mrb[9].mxu1 }
 0x68c   : > { %v1040_v35 = vpop.f32.mrb[10].mxu1 }
 0x68d   : > { %1045 = vrot.lane.b32.xlu1 %v1040_v35, %s2002_s11  ;;  %v1622_v1 = vpop.f32.mrb[11].mxu1 }
 0x690   : > { %v1214_v36 = vpop.f32.mrb[12].mxu1 }
 0x691   : > { %1219 = vrot.lane.b32.xlu0 %v1214_v36, %s2003_s15  ;;  %v1632_v37 = vpop.f32.mrb[13].mxu1 }
 0x6fb   : > { %v872_v38 = vpop.permute.xlu0 %871 }
 0x6fc   : > { %875 = vst.msk [vmem:[#allocation5] sm:$0xff] %vm874_vm3, %v872_v38 }
 0x6ff   : > { %v1046_v0 = vpop.permute.xlu1 %1045 }
 0x700   : > { %1049 = vst.msk [vmem:[#allocation5] sm:$0xff] %vm1048_vm4, %v1046_v0 }
 0x703   : > { %v1220_v39 = vpop.permute.xlu0 %1219 }
 0x704   : > { %1223 = vst.msk [vmem:[#allocation5] sm:$0xff] %vm1222_vm5, %v1220_v39 }
 0x70b   : > { %v1224_v40 = vld [vmem:[#allocation5] sm:$0xff] }
 0x70c   : > { %1642 = vmatmul.mubr.msk.f32.vlgmr.msra.gmra.mrb[8].mxu0 %vm305_vm1, %v1224_v40 }
 0x70d   : > { %1883 = shalt.err (!%p1880_p11)
}
 0x70e   : > { %s1884_s11 = scalar_lea.hbm %s2336_s17, 512  ;;  %s1888_s10 = scalar_lea.hbm %s2429_s5, 1024 }
 0x70f   : > { %p1885_p0 = scmp.ne.s32.totalorder %s2336_s17, %s1884_s11  ;;  %p1889_p6 = scmp.lt.u32.totalorder %s2336_s17, %s2429_s5 }
 0x710   : > { %p1890_p7 = scmp.lt.u32.totalorder %s1888_s10, %s1884_s11  ;;  %p1892_p8 = scmp.lt.u32.totalorder %s1884_s11, %s2336_s17 }
 0x711   : > { %p1886_p4 = pnand %p1885_p0, %p2444_p12 }
 0x712   : > { %p1891_p2 = por %p1890_p7, %p1889_p6 }
 0x713   : > { %p1887_p13 = pneg %p1886_p4 }
 0x714   : > { %p1893_p1 = por %p1892_p8, %p1891_p2 }
 0x716   : > { %p1894_p10 = pnand %p1893_p1, %p1887_p13 }
 0x718   : > { %1897 = shalt.err (!%p1894_p10)
}
 0x719   : > { %s2005_s28 = smov 128   ;;  %v1514_v41 = vld [vmem:[%s2427_s3] ss:$0 sm:$0xff]  ;;  %s1518_s11 = sshll.u32 %s1980_s21, 7 }
 0x71a   : > { %1679 = dma.vmem_to_hbm [thread:$0]  (%p2444_p12), %s2338_s14, 512, %s2336_s17, %s1317_s26, %s2005_s28, %s2005_s28, %s2001_s9  }
 0x71b   : > { %s288_s15 = scalar_lea.vmem [#allocation12], %s1491_s25  ;;  %s2374_s30 = scalar_lea.hbm %s2428_s4, %s1518_s11 }
 0x71c   : > { %s1331_s27 = sshll.u32 %s288_s15, 4  ;;  %s1312_s9 = scalar_lea.sflag [#allocation8], %s2222_s13  ;;  %s2376_s27 = int_to_ptr.vmem [resolvable:$true] %s1331_s27 }
 0x71d   : > { %s1898_s21 = scalar_lea.vmem %s2376_s27, 128  ;;  %s2006_s25 = smov [#allocation12]  }
 0x71e   : > { %p1899_p3 = scmp.ne.s32.totalorder %s2376_s27, %s1898_s21  ;;  %s1902_s14 = sshll.u32 %s2006_s25, 4  ;;  %s1903_s14 = int_to_ptr.vmem [resolvable:$false] %s1902_s14 }
 0x71f   : > { %s1904_s17 = scalar_lea.vmem %s1903_s14, 256  ;;  %p1905_p11 = scmp.lt.s32.totalorder %s2376_s27, %s1903_s14 }
 0x720   : > { %p1900_p5 = pnand %p1899_p3, %p2444_p12  ;;  %p1906_p0 = scmp.lt.s32.totalorder %s1904_s17, %s1898_s21 }
 0x722   : > { %p1901_p9 = pneg %p1900_p5  ;;  %p1907_p4 = por %p1906_p0, %p1905_p11 }
 0x724   : > { %p1908_p13 = pnand %p1907_p4, %p1901_p9 }
 0x7df   : > { %v1306_v42 = vpop.f32.mrb[8].mxu0 }
 0x7e0   : > { %v1307_v43 = vadd.f32 %v1514_v41, %v1306_v42  ;;  %v1643_v44 = vpop.f32.mrb[9].mxu0 }
 0x7e2   : > { %1310 = vst.msk [vmem:[%s288_s15] sm:$0xff] %vm305_vm1, %v1307_v43 }
 0x7e3   : > { %1911 = shalt.err (!%p1908_p13)
}
 0x7e4   : > { %s1912_s13 = scalar_lea.hbm %s2374_s30, 128  ;;  %s1916_s24 = scalar_lea.hbm %s2428_s4, 256 }
 0x7e5   : > { %p1913_p6 = scmp.ne.s32.totalorder %s2374_s30, %s1912_s13  ;;  %p1917_p8 = scmp.lt.u32.totalorder %s2374_s30, %s2428_s4 }
 0x7e6   : > { %p1918_p1 = scmp.lt.u32.totalorder %s1916_s24, %s1912_s13  ;;  %p1920_p3 = scmp.lt.u32.totalorder %s1912_s13, %s2374_s30 }
 0x7e7   : > { %p1914_p7 = pnand %p1913_p6, %p2444_p12 }
 0x7e8   : > { %p1919_p10 = por %p1918_p1, %p1917_p8 }
 0x7e9   : > { %p1915_p2 = pneg %p1914_p7 }
 0x7ea   : > { %p1921_p5 = por %p1920_p3, %p1919_p10 }
 0x7ec   : > { %p1922_p9 = pnand %p1921_p5, %p1915_p2 }
 0x7ee   : > { %1925 = shalt.err (!%p1922_p9)
}
 0x7ef   : > { %1678 = dma.vmem_to_hbm [thread:$0]  (%p2444_p12), %s2376_s27, 128, %s2374_s30, %s1312_s9  }
 0x7f0 PF: > { %s1360_s15 = sand.u32 1, %s1968_s18   ;;  %p2445_p11 = scmp.ne.s32.totalorder %s2437_s29, 0 }
 0x7f1   : > { %p2446_p0 = scmp.ge.s32.totalorder %s1988_s23, 2  ;;  %s1361_s10 = scalar_lea.sflag [#allocation8], %s1360_s15 }
 0x7f3   : > { %p1694_p4 = pnand %p2446_p0, %p2445_p11 }
 0x7f5   : > { %1959 = dma.done.wait (!%p1694_p4), %s1361_s10, 128  }
 0x7f6   : > { %1961 = vsyncadd (!%p1694_p4), %s1361_s10, 4294967168  ;;  %s1370_s16 = scalar_lea.sflag [#allocation14], %s1360_s15 }
 0x7f7   : > { %1963 = dma.done.wait (!%p1694_p4), %s1370_s16, 512  }
 0x7f8   : > { %1965 = vsyncadd (!%p1694_p4), %s1370_s16, 4294966784  ;;  %s26_s23 = sadd.s32 1, %s1988_s23   ;;  %s2447_s18 = smov %s1972_s19 }
 0x7f9   : > { %p23_p13 = scmp.ge.s32.totalorder %s26_s23, 4   ;;  %s2448_s19 = smov %s1976_s20 }
 0x7fa   : > { %s2449_s20 = smov %s2179_s6  ;;  %s2450_s21 = smov %s1984_s22 }
 0x7fb   : > { %s2451_s22 = smov %s2453_s12  ;;  %25 = sbr.rel (!%p23_p13) target bundleno = 9 (0x9), region = 116 }
 0x802   :  { %1375 = vsyncpa [#allocation7], 1 }
 0x803   :  { %1377 = vsyncpa [#allocation7 + $0x1], 1 }
 0x804   :  { %1378 = vsyncpa [#allocation10], 1 }
 0x805   :  { %1379 = vsyncpa [#allocation8], 1 }
 0x806   :  { %1381 = vsyncpa [#allocation8 + $0x1], 1 }
 0x807   :  { %1382 = vsyncpa [#allocation14], 1 }
 0x808   :  { %1384 = vsyncpa [#allocation14 + $0x1], 1 }

</bundles_post_ra>
